<compile_context>
chip_gen: v5e
topology: v5e:2x2
jax: 0.10.0
libtpu: 0.0.40
codegen_flags: <defaults>
</compile_context>

<pallas_src>
import jax
import jax.numpy as jnp
from jax.experimental import pallas as pl
from jax.experimental.pallas import tpu as pltpu

LANE = 128


def _sublane(dtype):
    # f32 vreg tile is (8,128); 2-byte dtypes (bf16) pack (16,128).
    return 16 if jnp.dtype(dtype).itemsize == 2 else 8


def _round_up(a, b):
    return ((a + b - 1) // b) * b


def feature_decoder_kernel(params_ref, x_ref, out_ref):
    """params_ref: SMEM (4,) f32 = [w1, b1, w2, b2]; x/out: (tile_m, cols)."""
    # Hoist the scalar reads (and implied scalar->vreg broadcasts) once.
    w1 = params_ref[0]
    b1 = params_ref[1]
    w2 = params_ref[2]
    b2 = params_ref[3]

    x = x_ref[...].astype(jnp.float32)        # lane-dense tile, f32 compute
    v = jnp.tanh(x * w1 + b1)                 # Linear(1,1) + tanh (VPU + EUP)
    out_ref[...] = (v * w2 + b2).astype(out_ref.dtype)   # Linear(1,1)


def feature_decoder(parent_feature, params, *, cols=512, max_tile_rows=1024):
    """parent_feature: (..., 1) float32/bfloat16. Returns same shape/dtype."""
    assert cols % LANE == 0
    assert max_tile_rows % 16 == 0
    # The elementwise collapse is only valid for Linear(1,1) weights.
    assert params["w1"].shape == (1, 1) and params["w2"].shape == (1, 1)
    assert params["b1"].shape == (1,) and params["b2"].shape == (1,)

    orig_shape = parent_feature.shape
    orig_dtype = parent_feature.dtype
    io_dtype = orig_dtype if orig_dtype in (jnp.float32, jnp.bfloat16) else jnp.float32
    sub = _sublane(io_dtype)

    flat = parent_feature.reshape(-1).astype(io_dtype)
    n = flat.shape[0]

    # Pack the four Linear(1,1) scalars into one SMEM-resident array.
    packed = jnp.stack([
        params["w1"].reshape(()),
        params["b1"].reshape(()),
        params["w2"].reshape(()),
        params["b2"].reshape(()),
    ]).astype(jnp.float32)                    # (4,)

    # Lane-dense 2-D layout.  Only pad the sub-`cols` remainder (no rounding
    # of rows to tile_m) -- the ragged last row-block is masked by Pallas.
    rows = pl.cdiv(n, cols)
    padded = rows * cols
    if padded != n:
        flat = jnp.pad(flat, (0, padded - n))
    x2d = flat.reshape(rows, cols)

    # Tile sizing: ~1-2 MiB blocks; >=2 grid steps when the batch is large
    # enough that each half still makes a decent tile (v7x megacore).
    if rows > max_tile_rows:
        tile_m = max_tile_rows
    elif rows >= 512:
        tile_m = _round_up(pl.cdiv(rows, 2), sub)
    else:
        tile_m = rows                          # single full-extent block
    grid = (pl.cdiv(rows, tile_m),)

    out2d = pl.pallas_call(
        feature_decoder_kernel,
        out_shape=jax.ShapeDtypeStruct((rows, cols), io_dtype),
        grid=grid,
        in_specs=[
            # All scalars in one SMEM array (copied once, not per grid step).
            pl.BlockSpec(memory_space=pltpu.MemorySpace.SMEM),
            # Lane-dense batch tile, auto double-buffered by Pallas.
            pl.BlockSpec((tile_m, cols), lambda i: (i, 0)),
        ],
        out_specs=pl.BlockSpec((tile_m, cols), lambda i: (i, 0)),
        compiler_params=pltpu.CompilerParams(
            dimension_semantics=("parallel",),
            vmem_limit_bytes=32 * 1024 * 1024,
        ),
    )(packed, x2d)

    out_flat = out2d.reshape(-1)
    if padded != n:
        out_flat = out_flat[:n]
    return out_flat.reshape(orig_shape).astype(orig_dtype)


def make_params(key):
    """Deterministic synthetic init mimicking nn.Linear(1,1) shapes."""
    k1, k2, k3, k4 = jax.random.split(key, 4)
    return {
        "w1": jax.random.normal(k1, (1, 1), jnp.float32),  # mlp.weight
        "b1": jax.random.normal(k2, (1,), jnp.float32),    # mlp.bias
        "w2": jax.random.normal(k3, (1, 1), jnp.float32),  # mlp2.weight
        "b2": jax.random.normal(k4, (1,), jnp.float32),    # mlp2.bias
    }


def reference(parent_feature, params):
    v = jnp.tanh(parent_feature @ params["w1"].T + params["b1"])
    return v @ params["w2"].T + params["b2"]


if __name__ == "__main__":
    key = jax.random.PRNGKey(0)
    kx, kx2, kx3, kp = jax.random.split(key, 4)
    params = make_params(kp)

    # Natural Linear(1,1)-shaped input: small batch of parent features.
    B = 8
    x = jax.random.normal(kx, (B, 1), jnp.float32)
    out = feature_decoder(x, params)
    jax.block_until_ready(out)
    assert out.shape == (B, 1) and out.dtype == jnp.float32
    assert jnp.allclose(out, reference(x, params), atol=1e-4, rtol=1e-5)

    # Ragged batch: exercises the (pad < cols) + single-block path.
    B2 = 3000
    x2 = jax.random.normal(kx2, (B2, 1), jnp.float32)
    out2 = feature_decoder(x2, params)
    jax.block_until_ready(out2)
    assert out2.shape == (B2, 1)
    assert jnp.allclose(out2, reference(x2, params), atol=1e-4, rtol=1e-5)

    # Larger batch: 2 grid steps (both v7x TCs get work) + ragged last block.
    B3 = 300_037
    x3 = jax.random.normal(kx3, (B3, 1), jnp.float32)
    out3 = feature_decoder(x3, params)
    jax.block_until_ready(out3)
    assert out3.shape == (B3, 1)
    assert jnp.allclose(out3, reference(x3, params), atol=1e-4, rtol=1e-5)

    # bf16 I/O passthrough (half HBM bytes; compute stays f32 in-kernel).
    x4 = x2.astype(jnp.bfloat16)
    out4 = feature_decoder(x4, params)
    jax.block_until_ready(out4)
    assert out4.dtype == jnp.bfloat16 and out4.shape == (B2, 1)
    ref4 = reference(x4.astype(jnp.float32), params)
    assert jnp.allclose(out4.astype(jnp.float32), ref4, atol=5e-2, rtol=5e-2)

    print("KERNEL_OK")
</pallas_src>

<mosaic_0001>
module attributes {stable_mosaic.version = 11 : i64} {
  func.func @feature_decoder_kernel(%arg0: i32, %arg1: memref<4xf32, #tpu.memory_space<smem>>, %arg2: memref<1x512xf32, #tpu.memory_space<vmem>>, %arg3: memref<1x512xf32, #tpu.memory_space<vmem>>) attributes {dimension_semantics = [#tpu.dimension_semantics<parallel>], iteration_bounds = array<i64: 1>, scalar_prefetch = 0 : i64, scratch_operands = 0 : i64, tpu.core_type = #tpu.core_type<tc>, window_params = [{transform_indices = @transform_0, window_bounds = array<i64: 4>}, {transform_indices = @transform_1, window_bounds = array<i64: 1, 512>}, {transform_indices = @transform_2, window_bounds = array<i64: 1, 512>}]} {
    %c0 = arith.constant 0 : index
    %0 = memref.load %arg1[%c0] : memref<4xf32, #tpu.memory_space<smem>>
    %c1 = arith.constant 1 : index
    %1 = memref.load %arg1[%c1] : memref<4xf32, #tpu.memory_space<smem>>
    %c2 = arith.constant 2 : index
    %2 = memref.load %arg1[%c2] : memref<4xf32, #tpu.memory_space<smem>>
    %c3 = arith.constant 3 : index
    %3 = memref.load %arg1[%c3] : memref<4xf32, #tpu.memory_space<smem>>
    %c0_0 = arith.constant 0 : index
    %c0_1 = arith.constant 0 : index
    %4 = vector.load %arg2[%c0_0, %c0_1] : memref<1x512xf32, #tpu.memory_space<vmem>>, vector<1x512xf32>
    %5 = vector.broadcast %0 : f32 to vector<1x512xf32>
    %6 = arith.mulf %4, %5 : vector<1x512xf32>
    %7 = vector.broadcast %1 : f32 to vector<1x512xf32>
    %8 = arith.addf %6, %7 : vector<1x512xf32>
    %9 = math.tanh %8 : vector<1x512xf32>
    %10 = vector.broadcast %2 : f32 to vector<1x512xf32>
    %11 = arith.mulf %9, %10 : vector<1x512xf32>
    %12 = vector.broadcast %3 : f32 to vector<1x512xf32>
    %13 = arith.addf %11, %12 : vector<1x512xf32>
    %c0_2 = arith.constant 0 : index
    %c0_3 = arith.constant 0 : index
    %14 = vector.load %arg3[%c0_2, %c0_3] : memref<1x512xf32, #tpu.memory_space<vmem>>, vector<1x512xf32>
    tpu.vector_store %arg3[%c0_2, %c0_3], %13 {strides = array<i32>} : memref<1x512xf32, #tpu.memory_space<vmem>>, vector<1x512xf32>,
    return
  }
  func.func @transform_0(%arg0: i32) -> i32 {
    %c0_i32 = arith.constant 0 : i32
    %c0_i32_0 = arith.constant 0 : i32
    return %c0_i32 : i32
  }
  func.func @transform_1(%arg0: i32) -> (i32, i32) {
    %c0_i32 = arith.constant 0 : i32
    %c0_i32_0 = arith.constant 0 : i32
    return %arg0, %c0_i32 : i32, i32
  }
  func.func @transform_2(%arg0: i32) -> (i32, i32) {
    %c0_i32 = arith.constant 0 : i32
    %c0_i32_0 = arith.constant 0 : i32
    return %arg0, %c0_i32 : i32, i32
  }
}

</mosaic_0001>

<bundles_post_ra>
// kernel: tpu_custom_call.1
= control target key start
LH: loop header
LB: loop body
LE: loop exit
PB: predicated region body
PF: predicated region fallthrough
CT: control target
= control target key end

     0   :  { %7 = vsyncpa [#allocation5], 0  ;;  %s177_s0 = inlined_call_operand.hbm [shape: f32[4], index: 0, kind: input, shape index: {}]   ;;  %s178_s1 = inlined_call_operand.hbm [shape: f32[1,512], index: 1, kind: input, shape index: {}]   ;;  %s179_s2 = inlined_call_operand.hbm [shape: f32[1,512], index: 2, kind: output, shape index: {}]  }
   0x1   :  { %8 = vsyncpa [#allocation3], 0 }
   0x2   :  { %9 = vsyncpa [#allocation4], 0  ;;  %s15_s11 = sshll.u32 %s177_s0, 4  ;;  %s24_s14 = sshll.u32 %s178_s1, 4  ;;  %s16_s11 = int_to_ptr.hbm [resolvable:$true] %s15_s11  ;;  %s25_s14 = int_to_ptr.hbm [resolvable:$true] %s24_s14 }
   0x3   :  { %s150_s15 = smov [#allocation2]   ;;  %s151_s16 = smov [#allocation6]  }
   0x4   :  { %18 = dma.hbm_to_smem %s16_s11, 16, %s150_s15, [#allocation5]  }
   0x5   :  { %s26_s17 = sshll.u32 %s151_s16, 4  ;;  %s27_s17 = int_to_ptr.vmem [resolvable:$true] %s26_s17 }
   0x6   :  { %29 = dma.hbm_to_vmem [thread:$0]  %s25_s14, 64, %s27_s17, [#allocation3]  }
   0x7   :  { %144 = dma.done.wait [#allocation5], 16  }
   0x8   :  { %145 = vsyncadd [#allocation5], 4294967280 }
   0x9   :  { %146 = dma.done.wait [#allocation3], 64  }
   0xa   :  { %147 = vsyncadd [#allocation3], 4294967232 }
   0xb   :  { %38 = sfence }
   0xc   :  { %s39_s18 = sld [smem:[#allocation2]]  ;;  %v43_v0 = vld [vmem:[#allocation6] sm:$0xf]  ;;  %v53_v6 = vlaneseq  ;;  %s152_s20 = smov [#allocation7]  }
   0xd   :  { %s76_s19 = sld [smem:[#allocation2 + $0x1]]  ;;  %s63_s21 = sshll.u32 %s152_s20, 4  ;;  %s64_s21 = int_to_ptr.vmem [resolvable:$true] %s63_s21 }
   0xe   :  { %s77_s0 = sld [smem:[#allocation2 + $0x2]]  ;;  %s65_s24 = sshll.u32 %s179_s2, 4  ;;  %vm55_vm0 = vcmp.lt.s32.totalorder %v53_v6, 512  ;;  %s66_s24 = int_to_ptr.hbm [resolvable:$true] %s65_s24 }
   0xf   :  { %s78_s1 = sld [smem:[#allocation2 + $0x3]] }
  0x12   :  { %v44_v1 = vstv %s39_s18 }
  0x13   :  { %v45_v2 = vmul.f32 %v44_v1, %v43_v0  ;;  %v46_v3 = vstv %s76_s19 }
  0x14   :  { %v49_v5 = vstv %s77_s0 }
  0x15   :  { %v47_v4 = vadd.f32 %v46_v3, %v45_v2  ;;  %v51_v8 = vstv %s78_s1 }
  0x17   :  { %82 = vtanh.f32 %v47_v4 }
  0x1d   :  { %v83_v7 = vpop.eup %82 }
  0x1e   :  { %v50_v9 = vmul.f32 %v83_v7, %v49_v5 }
  0x20   :  { %v52_v10 = vadd.f32 %v51_v8, %v50_v9 }
  0x22   :  { %57 = vst.msk [vmem:[#allocation7] sm:$0xf] %vm55_vm0, %v52_v10 }
  0x23   :  { %68 = dma.vmem_to_hbm [thread:$0]  %s64_s21, 64, %s66_s24, [#allocation4]  }
  0x24   :  { %148 = dma.done.wait [#allocation4], 64  }
  0x25   :  { %149 = vsyncadd [#allocation4], 4294967232 }
  0x26   :  { %73 = vsyncpa [#allocation3], 1 }
  0x27   :  { %74 = vsyncpa [#allocation4], 1 }
  0x28   :  { %75 = vsyncpa [#allocation5], 1 }

</bundles_post_ra>
